<compile_context>
chip_gen: v7x
topology: tpu7x:2x2x1
jax: 0.10.0
libtpu: 0.0.40
codegen_flags: <defaults>
</compile_context>

<pallas_src>
from functools import partial

import jax
import jax.numpy as jnp
from jax.experimental import pallas as pl
from jax.experimental.pallas import tpu as pltpu


def _round_up(x: int, m: int) -> int:
    return ((x + m - 1) // m) * m


def _choose_batch_tile(batch: int, block_b: int = 512) -> int:
    """Batch tile: multiple of 8 sublanes, >= 2 grid steps when B > 8 (v7x
    megacore), and batch-padding waste kept below ~12.5%."""
    b8 = _round_up(batch, 8)
    if b8 <= 8:
        return 8
    tb = min(block_b, _round_up(pl.cdiv(b8, 2), 8))
    while tb > 8 and (_round_up(b8, tb) - b8) * 8 > b8:
        tb -= 8
    return tb


def mlp_kernel(x_ref, w1_ref, b1_ref, w2_ref, b2_ref, o_ref):
    # In-kernel cast of the f32 activation tile to the matmul dtype (VPU).
    x = x_ref[...].astype(w1_ref.dtype)
    # Layer 1: [TB, IN] @ [IN, HID], f32 MXU accumulation.
    h = jnp.dot(x, w1_ref[...], preferred_element_type=jnp.float32)
    # Bias + ReLU in f32 on the VPU (broadcast [1, HID] over [TB, HID]).
    h = jnp.maximum(h + b1_ref[...], 0.0)
    # Layer 2: [TB, HID] @ [HID, OUT], f32 MXU accumulation.
    y = jnp.dot(h.astype(w2_ref.dtype), w2_ref[...],
                preferred_element_type=jnp.float32)
    # bf16 output store: halves the largest HBM stream of this mem-bound kernel.
    o_ref[...] = (y + b2_ref[...]).astype(o_ref.dtype)


def prepare_params(w1, b1, w2, b2, compute_dtype=jnp.bfloat16):
    """One-time layout prep (outside the per-call hot path).

    w1: [hidden, input]  (PyTorch layout)   b1: [hidden]
    w2: [output, hidden] (PyTorch layout)   b2: [output]

    Weights are transposed to [in, out] and cast to `compute_dtype`; biases
    stay f32 as [1, dim] rows. True feature widths are kept (no 128-padding).
    """
    w1_t = jnp.asarray(w1).T.astype(compute_dtype)        # [in,  hid]
    w2_t = jnp.asarray(w2).T.astype(compute_dtype)        # [hid, out]
    b1_r = jnp.asarray(b1, jnp.float32).reshape(1, -1)    # [1,   hid]
    b2_r = jnp.asarray(b2, jnp.float32).reshape(1, -1)    # [1,   out]
    return (w1_t, b1_r, w2_t, b2_r)


@partial(jax.jit, static_argnames=("block_b",))
def whitebox_forward(x, params, block_b=512):
    """Fused MLP forward: relu(x @ W1^T + b1) @ W2^T + b2  -> float32."""
    w1_t, b1_r, w2_t, b2_r = params
    in_sz, hid = w1_t.shape
    out = w2_t.shape[1]

    B = x.shape[0]
    assert x.shape[1] == in_sz, "input feature size mismatch"

    tb = _choose_batch_tile(B, block_b)
    b_pad = _round_up(B, tb)

    # Only the batch dim is padded; x stays float32 (cast happens in-kernel).
    if b_pad != B:
        x_in = jnp.zeros((b_pad, in_sz), x.dtype).at[:B].set(x)
    else:
        x_in = x

    grid = (b_pad // tb,)
    w_item = jnp.dtype(w1_t.dtype).itemsize
    flops = 2 * b_pad * (in_sz * hid + hid * out)
    bytes_accessed = (x_in.size * x_in.dtype.itemsize
                      + (w1_t.size + w2_t.size) * w_item
                      + (b1_r.size + b2_r.size) * 4
                      + b_pad * out * 2)

    # VMEM budget from the actual buffer set: double-buffered x/out tiles,
    # resident weights/biases (2 bufs each), hidden-activation scratch.
    vmem_need = (2 * tb * in_sz * 4 + 2 * tb * out * 2
                 + 2 * (w1_t.size + w2_t.size) * w_item
                 + 2 * (b1_r.size + b2_r.size) * 4
                 + tb * hid * 4)
    vmem_limit = int(min(64 * 1024 * 1024,
                         max(2 * vmem_need + (2 << 20), 4 << 20)))

    vmem = pltpu.MemorySpace.VMEM
    y = pl.pallas_call(
        mlp_kernel,
        out_shape=jax.ShapeDtypeStruct((b_pad, out), jnp.bfloat16),
        grid=grid,
        in_specs=[
            # Activations: streamed / double-buffered per batch tile.
            pl.BlockSpec((tb, in_sz), lambda i: (i, 0), memory_space=vmem),
            # Weights + biases: constant block index -> VMEM-resident.
            pl.BlockSpec((in_sz, hid), lambda i: (0, 0), memory_space=vmem),
            pl.BlockSpec((1, hid), lambda i: (0, 0), memory_space=vmem),
            pl.BlockSpec((hid, out), lambda i: (0, 0), memory_space=vmem),
            pl.BlockSpec((1, out), lambda i: (0, 0), memory_space=vmem),
        ],
        out_specs=pl.BlockSpec((tb, out), lambda i: (i, 0),
                               memory_space=vmem),
        compiler_params=pltpu.CompilerParams(
            dimension_semantics=("parallel",),
            vmem_limit_bytes=vmem_limit),
        cost_estimate=pl.CostEstimate(flops=flops, transcendentals=0,
                                      bytes_accessed=bytes_accessed),
    )(x_in, w1_t, b1_r, w2_t, b2_r)

    # Batch-row slice fused with the f32 cast (module returns float32).
    return y[:B].astype(jnp.float32)


if __name__ == "__main__":
    # Shapes consistent with the module: input=16, hidden=32, output=8, batch=2.
    input_size, hidden_size, output_size = 16, 32, 8
    batch = 2

    key = jax.random.PRNGKey(0)
    k_x, k_w1, k_b1, k_w2, k_b2 = jax.random.split(key, 5)

    x = jax.random.normal(k_x, (batch, input_size), dtype=jnp.float32)
    lim1 = 1.0 / (input_size ** 0.5)
    lim2 = 1.0 / (hidden_size ** 0.5)
    w1 = jax.random.uniform(k_w1, (hidden_size, input_size),
                            minval=-lim1, maxval=lim1, dtype=jnp.float32)
    b1 = jax.random.uniform(k_b1, (hidden_size,),
                            minval=-lim1, maxval=lim1, dtype=jnp.float32)
    w2 = jax.random.uniform(k_w2, (output_size, hidden_size),
                            minval=-lim2, maxval=lim2, dtype=jnp.float32)
    b2 = jax.random.uniform(k_b2, (output_size,),
                            minval=-lim2, maxval=lim2, dtype=jnp.float32)

    params = prepare_params(w1, b1, w2, b2, compute_dtype=jnp.bfloat16)
    out = whitebox_forward(x, params)
    out = jax.block_until_ready(out)
    assert out.shape == (batch, output_size)

    # Reference 1: same bf16 operand/output rounding, f32 accumulation (tight).
    bf = lambda a: a.astype(jnp.bfloat16).astype(jnp.float32)
    h_ref = jnp.maximum(bf(x) @ bf(w1).T + b1, 0.0)
    ref_tight = bf(bf(h_ref) @ bf(w2).T + b2)
    assert jnp.allclose(out, ref_tight, atol=1e-2, rtol=1e-2)

    # Reference 2: full-f32 PyTorch-equivalent forward (loose sanity check;
    # bf16 matmul operands + bf16 output add ~0.5% relative error).
    ref_f32 = jnp.maximum(x @ w1.T + b1, 0.0) @ w2.T + b2
    assert jnp.allclose(out, ref_f32, atol=5e-2, rtol=5e-2)

    print("KERNEL_OK")
</pallas_src>

<mosaic_0001>
module attributes {stable_mosaic.version = 11 : i64} {
  func.func @mlp_kernel(%arg0: i32, %arg1: memref<8x16xf32, #tpu.memory_space<vmem>>, %arg2: memref<16x32xbf16, #tpu.memory_space<vmem>>, %arg3: memref<1x32xf32, #tpu.memory_space<vmem>>, %arg4: memref<32x8xbf16, #tpu.memory_space<vmem>>, %arg5: memref<1x8xf32, #tpu.memory_space<vmem>>, %arg6: memref<8x8xbf16, #tpu.memory_space<vmem>>) attributes {dimension_semantics = [#tpu.dimension_semantics<parallel>], iteration_bounds = array<i64: 1>, scalar_prefetch = 0 : i64, scratch_operands = 0 : i64, tpu.core_type = #tpu.core_type<tc>, window_params = [{transform_indices = @transform_0, window_bounds = array<i64: 8, 16>}, {pipeline_mode = #tpu.pipeline_mode<synchronous>, transform_indices = @transform_1, window_bounds = array<i64: 16, 32>}, {pipeline_mode = #tpu.pipeline_mode<synchronous>, transform_indices = @transform_2, window_bounds = array<i64: 1, 32>}, {pipeline_mode = #tpu.pipeline_mode<synchronous>, transform_indices = @transform_3, window_bounds = array<i64: 32, 8>}, {pipeline_mode = #tpu.pipeline_mode<synchronous>, transform_indices = @transform_4, window_bounds = array<i64: 1, 8>}, {transform_indices = @transform_5, window_bounds = array<i64: 8, 8>}]} {
    %c0 = arith.constant 0 : index
    %c0_0 = arith.constant 0 : index
    %0 = vector.load %arg1[%c0, %c0_0] : memref<8x16xf32, #tpu.memory_space<vmem>>, vector<8x16xf32>
    %1 = arith.truncf %0 : vector<8x16xf32> to vector<8x16xbf16>
    %c0_1 = arith.constant 0 : index
    %c0_2 = arith.constant 0 : index
    %2 = vector.load %arg2[%c0_1, %c0_2] : memref<16x32xbf16, #tpu.memory_space<vmem>>, vector<16x32xbf16>
    %cst = arith.constant dense<0.000000e+00> : vector<8x32xf32>
    %3 = tpu.matmul %1, %2, %cst {dimension_numbers = #tpu.dot_dimension_numbers<[1], [0], [0], [1], [0, 0, 1, 1], [], []>} : vector<8x16xbf16>, vector<16x32xbf16>, vector<8x32xf32> -> vector<8x32xf32>
    %c0_3 = arith.constant 0 : index
    %c0_4 = arith.constant 0 : index
    %4 = vector.load %arg3[%c0_3, %c0_4] : memref<1x32xf32, #tpu.memory_space<vmem>>, vector<1x32xf32>
    %5 = vector.broadcast %4 : vector<1x32xf32> to vector<8x32xf32>
    %6 = arith.addf %3, %5 : vector<8x32xf32>
    %cst_5 = arith.constant 0.000000e+00 : f32
    %7 = vector.broadcast %cst_5 : f32 to vector<8x32xf32>
    %8 = arith.maximumf %6, %7 : vector<8x32xf32>
    %9 = arith.truncf %8 : vector<8x32xf32> to vector<8x32xbf16>
    %c0_6 = arith.constant 0 : index
    %c0_7 = arith.constant 0 : index
    %10 = vector.load %arg4[%c0_6, %c0_7] : memref<32x8xbf16, #tpu.memory_space<vmem>>, vector<32x8xbf16>
    %cst_8 = arith.constant dense<0.000000e+00> : vector<8x8xf32>
    %11 = tpu.matmul %9, %10, %cst_8 {dimension_numbers = #tpu.dot_dimension_numbers<[1], [0], [0], [1], [0, 0, 1, 1], [], []>} : vector<8x32xbf16>, vector<32x8xbf16>, vector<8x8xf32> -> vector<8x8xf32>
    %c0_9 = arith.constant 0 : index
    %c0_10 = arith.constant 0 : index
    %12 = vector.load %arg5[%c0_9, %c0_10] : memref<1x8xf32, #tpu.memory_space<vmem>>, vector<1x8xf32>
    %13 = vector.broadcast %12 : vector<1x8xf32> to vector<8x8xf32>
    %14 = arith.addf %11, %13 : vector<8x8xf32>
    %15 = arith.truncf %14 : vector<8x8xf32> to vector<8x8xbf16>
    %c0_11 = arith.constant 0 : index
    %c0_12 = arith.constant 0 : index
    %16 = vector.load %arg6[%c0_11, %c0_12] : memref<8x8xbf16, #tpu.memory_space<vmem>>, vector<8x8xbf16>
    tpu.vector_store %arg6[%c0_11, %c0_12], %15 {strides = array<i32>} : memref<8x8xbf16, #tpu.memory_space<vmem>>, vector<8x8xbf16>,
    return
  }
  func.func @transform_0(%arg0: i32) -> (i32, i32) {
    %c0_i32 = arith.constant 0 : i32
    %c0_i32_0 = arith.constant 0 : i32
    return %arg0, %c0_i32 : i32, i32
  }
  func.func @transform_1(%arg0: i32) -> (i32, i32) {
    %c0_i32 = arith.constant 0 : i32
    %c0_i32_0 = arith.constant 0 : i32
    %c0_i32_1 = arith.constant 0 : i32
    return %c0_i32, %c0_i32_0 : i32, i32
  }
  func.func @transform_2(%arg0: i32) -> (i32, i32) {
    %c0_i32 = arith.constant 0 : i32
    %c0_i32_0 = arith.constant 0 : i32
    %c0_i32_1 = arith.constant 0 : i32
    return %c0_i32, %c0_i32_0 : i32, i32
  }
  func.func @transform_3(%arg0: i32) -> (i32, i32) {
    %c0_i32 = arith.constant 0 : i32
    %c0_i32_0 = arith.constant 0 : i32
    %c0_i32_1 = arith.constant 0 : i32
    return %c0_i32, %c0_i32_0 : i32, i32
  }
  func.func @transform_4(%arg0: i32) -> (i32, i32) {
    %c0_i32 = arith.constant 0 : i32
    %c0_i32_0 = arith.constant 0 : i32
    %c0_i32_1 = arith.constant 0 : i32
    return %c0_i32, %c0_i32_0 : i32, i32
  }
  func.func @transform_5(%arg0: i32) -> (i32, i32) {
    %c0_i32 = arith.constant 0 : i32
    %c0_i32_0 = arith.constant 0 : i32
    return %arg0, %c0_i32 : i32, i32
  }
}

</mosaic_0001>

<bundles_post_ra>
// kernel: whitebox_forward.1
= control target key start
LH: loop header
LB: loop body
LE: loop exit
PB: predicated region body
PF: predicated region fallthrough
CT: control target
= control target key end

     0   :  { %v189_v0 = vmov 0.0   ;;  %vm190_vm0 = vmmov 0   ;;  %vm38_vm1 = vcmask 130048   ;;  %vm107_vm2 = vcmask 261120   ;;  %s242_s1 = inlined_call_operand.vmem [shape: bf16[16,32], index: 1, kind: input, shape index: {}]   ;;  %s243_s0 = inlined_call_operand.vmem [shape: f32[8,16], index: 0, kind: input, shape index: {}]   ;;  %s244_s3 = inlined_call_operand.vmem [shape: bf16[32,8], index: 3, kind: input, shape index: {}]   ;;  %s245_s2 = inlined_call_operand.vmem [shape: f32[1,32], index: 2, kind: input, shape index: {}]   ;;  %s246_s4 = inlined_call_operand.vmem [shape: f32[1,8], index: 4, kind: input, shape index: {}]   ;;  %s247_s5 = inlined_call_operand.vmem [shape: bf16[8,8], index: 5, kind: output, shape index: {}]  }
   0x1   :  { %170 = vmatprep.subr.bf16.mxu0 %v189_v0  ;;  %v186_v1 = vld [vmem:[%s242_s1] sm:$0xff]   ;;  %172 = vmatprep.mubr.msk.bf16.mxu0 %vm190_vm0, %v189_v0  ;;  %v188_v5 = vld [vmem:[%s244_s3 + $0x8] sm:$0xff]   ;;  %vm152_vm3 = vcmask 60416  }
   0x2   :  { %v21_v2 = vld [vmem:[%s243_s0] sm:$0xff]  ;;  %176 = vmatprep.subr.bf16.mxu1 %v189_v0  ;;  %180 = vmatprep.mubr.msk.bf16.mxu1 %vm190_vm0, %v189_v0 }
   0x3   :  { %171 = vmatpush3.bf16.msra.mxu0 %v186_v1  ;;  %v22_v3 = vpack.c.bf16 %v21_v2, %v21_v2  ;;  %v187_v4 = vld [vmem:[%s244_s3] sm:$0xff]  }
   0x4   :  { %177 = vmatpush3.bf16.msra.mxu1 %v187_v4  ;;  %v158_v6 = vld [vmem:[%s245_s2] ss:$0 sm:$0xff] }
   0x5   :  { %178 = vmatprep.subr.bf16.mxu1 %v189_v0  ;;  %v161_v14 = vld [vmem:[%s246_s4] ss:$0 sm:$0xff] }
   0x6   :  { %173 = vmatmul.mubr.msk.bf16.vlgmr.msra.gmra.mrb[0].mxu0 %vm38_vm1, %v22_v3 }
   0x8   :  { %179 = vmatpush3.bf16.msra.mxu1 %v188_v5 }
  0xd9   :  { %v76_v7 = vpop.f32.mrb[0].mxu0 }
  0xda   :  { %v77_v8 = vadd.f32 %v158_v6, %v76_v7  ;;  %v174_v9 = vpop.f32.mrb[1].mxu0 }
  0xdb   :  { %v79_v10 = vpop.f32.mrb[2].mxu0 }
  0xdc   :  { %v82_v11 = vmax.f32 %v77_v8, 0.0  ;;  %v175_v12 = vpop.f32.mrb[3].mxu0 }
  0xde   :  { %v83_v13 = vpack.c.bf16 %v82_v11, %v82_v11 }
  0xe0   :  { %181 = vmatmul.mubr.msk.bf16.vlgmr.msra.gmra.mrb[0].mxu1 %vm107_vm2, %v83_v13 }
 0x1b3   :  { %v145_v15 = vpop.f32.mrb[0].mxu1 }
 0x1b4   :  { %v146_v16 = vadd.f32 %v161_v14, %v145_v15  ;;  %v182_v17 = vpop.f32.mrb[1].mxu1 }
 0x1b5   :  { %v148_v18 = vpop.f32.mrb[2].mxu1 }
 0x1b6   :  { %v151_v19 = vpack.c.bf16 %v146_v16, %v146_v16  ;;  %v183_v20 = vpop.f32.mrb[3].mxu1 }
 0x1b8   :  { %153 = vst.msk [vmem:[%s247_s5] sm:$0xf] %vm152_vm3, %v151_v19 }

</bundles_post_ra>
